<compile_context>
chip_gen: v7x
topology: tpu7x:2x2x1
jax: 0.10.0
libtpu: 0.0.40
codegen_flags: <defaults>
</compile_context>

<pallas_src>
import functools

import jax
import jax.numpy as jnp
from jax.experimental import pallas as pl
from jax.experimental.pallas import tpu as pltpu


# ----------------------------- Pallas kernel -------------------------------

def gru_encoder_kernel(tok_ref, emb_ref, h_ref, w_ref, b_ref, out_ref, *, e, h):
    """Fused embedding gather + one GRU step (torch.nn.GRU gate order r|z|n).

    tok : SMEM (1,)      int32 token id
    emb : VMEM (V, E)    f32 embedding table
    h   : VMEM (1, H)    f32 previous hidden state
    w   : VMEM (E+H, 4H) bf16 packed gate weights, columns [ r | z | n_x | n_h ],
                         rows [ x-part (E rows) ; h-part (H rows) ]
    b   : VMEM (1, 4H)   f32 packed biases [ b_ir+b_hr | b_iz+b_hz | b_in | b_hn ]
    out : VMEM (1, 1, H) f32 new hidden state
    """
    tok = tok_ref[0]
    x = emb_ref[pl.ds(tok, 1), :].astype(jnp.bfloat16)        # (1, E) gathered row
    h_prev = h_ref[...]                                       # (1, H) f32

    # Both gate contributions on the MXU (bf16 operands, f32 accumulation).
    # Static row slices of the packed weight keep it a single 16 KiB DMA.
    g = (jnp.dot(x, w_ref[:e, :], preferred_element_type=jnp.float32)
         + jnp.dot(h_prev.astype(jnp.bfloat16), w_ref[e:, :],
                   preferred_element_type=jnp.float32)
         + b_ref[...])                                        # (1, 4H) f32

    r = jax.nn.sigmoid(g[:, 0 * h:1 * h])
    z = jax.nn.sigmoid(g[:, 1 * h:2 * h])
    n = jnp.tanh(g[:, 2 * h:3 * h] + r * g[:, 3 * h:4 * h])

    h_new = (1.0 - z) * n + z * h_prev                        # (1, H)
    out_ref[...] = h_new.reshape(out_ref.shape)               # (1, 1, H)


def gru_step_pallas(token, embedding, h_prev, w_packed, b_packed):
    """token:(1,)i32, embedding:(V,E)f32, h_prev:(1,H)f32,
    w_packed:(E+H,4H)bf16, b_packed:(1,4H)f32  ->  (1,1,H) f32."""
    _, E = embedding.shape
    H = b_packed.shape[1] // 4
    kernel = functools.partial(gru_encoder_kernel, e=E, h=H)

    cost = pl.CostEstimate(
        flops=2 * (E + H) * 4 * H,                  # one (1,E+H)@(E+H,4H) contraction
        transcendentals=3 * H,                       # 2 sigmoids + 1 tanh over H lanes
        bytes_accessed=(token.size * 4 + embedding.size * 4 + h_prev.size * 4
                        + w_packed.size * 2 + b_packed.size * 4 + H * 4),
    )

    return pl.pallas_call(
        kernel,
        out_shape=jax.ShapeDtypeStruct((1, 1, H), jnp.float32),
        # Gridless call: whole arrays resident in VMEM/SMEM, no pipeline bookkeeping.
        in_specs=[
            pl.BlockSpec(memory_space=pltpu.MemorySpace.SMEM),   # token id
            pl.BlockSpec(memory_space=pltpu.MemorySpace.VMEM),   # embedding table
            pl.BlockSpec(memory_space=pltpu.MemorySpace.VMEM),   # previous hidden
            pl.BlockSpec(memory_space=pltpu.MemorySpace.VMEM),   # packed weights
            pl.BlockSpec(memory_space=pltpu.MemorySpace.VMEM),   # packed biases
        ],
        out_specs=pl.BlockSpec(memory_space=pltpu.MemorySpace.VMEM),
        cost_estimate=cost,
    )(token, embedding, h_prev, w_packed, b_packed)


# ----------------------------- Parameter init ------------------------------

def init_params(key, input_dim, embed_dim, hidden_dim):
    ks = jax.random.split(key, 5)
    k = 1.0 / jnp.sqrt(hidden_dim)

    embedding = jax.random.normal(ks[0], (input_dim, embed_dim), jnp.float32)
    # torch.nn.GRU weights stored transposed for x @ W, gate order r|z|n
    w_ih = jax.random.uniform(ks[1], (embed_dim, 3 * hidden_dim), jnp.float32, -k, k)
    w_hh = jax.random.uniform(ks[2], (hidden_dim, 3 * hidden_dim), jnp.float32, -k, k)
    b_ih = jax.random.uniform(ks[3], (3 * hidden_dim,), jnp.float32, -k, k)
    b_hh = jax.random.uniform(ks[4], (3 * hidden_dim,), jnp.float32, -k, k)

    E, H = embed_dim, hidden_dim

    # ---- pack both gate matrices into one (E+H, 4H) weight.
    # Columns: [ r | z | n_x | n_h ] at H-lane offsets (4H = 128 for H=32, i.e. one
    # full 128-lane block).  Rows: x part (0..E), h part (E..E+H).
    w_packed = jnp.zeros((E + H, 4 * H), jnp.float32)
    w_packed = w_packed.at[:E, 0 * H:1 * H].set(w_ih[:, 0 * H:1 * H])        # r, x
    w_packed = w_packed.at[:E, 1 * H:2 * H].set(w_ih[:, 1 * H:2 * H])        # z, x
    w_packed = w_packed.at[:E, 2 * H:3 * H].set(w_ih[:, 2 * H:3 * H])        # n, x
    w_packed = w_packed.at[E:, 0 * H:1 * H].set(w_hh[:, 0 * H:1 * H])        # r, h
    w_packed = w_packed.at[E:, 1 * H:2 * H].set(w_hh[:, 1 * H:2 * H])        # z, h
    w_packed = w_packed.at[E:, 3 * H:4 * H].set(w_hh[:, 2 * H:3 * H])        # n, h
    w_packed = w_packed.astype(jnp.bfloat16)                                 # MXU-native

    # ---- pack biases: r/z biases pre-summed; the n-gate's b_hh stays separate
    # (it sits inside the r* term).  Kept in f32 (added after the f32 accumulate).
    b_packed = jnp.zeros((1, 4 * H), jnp.float32)
    b_packed = b_packed.at[0, 0 * H:1 * H].set(b_ih[0 * H:1 * H] + b_hh[0 * H:1 * H])
    b_packed = b_packed.at[0, 1 * H:2 * H].set(b_ih[1 * H:2 * H] + b_hh[1 * H:2 * H])
    b_packed = b_packed.at[0, 2 * H:3 * H].set(b_ih[2 * H:3 * H])
    b_packed = b_packed.at[0, 3 * H:4 * H].set(b_hh[2 * H:3 * H])

    return {
        "embedding": embedding,
        # raw (torch-layout, transposed) weights for the pure-JAX reference
        "w_ih": w_ih, "w_hh": w_hh, "b_ih": b_ih, "b_hh": b_hh,
        # packed weights consumed by the Pallas kernel
        "w_packed": w_packed, "b_packed": b_packed,
    }


# ----------------------------- Encoder forward -----------------------------

@jax.jit
def encoder_forward(params, token, hidden=None):
    """Mirrors Encoder.forward: embed -> view(1,1,-1) -> GRU -> (output, hidden).

    `hidden` is optional; omitted == torch default zero initial hidden state.
    """
    H = params["b_packed"].shape[1] // 4

    tok = jnp.asarray(token, jnp.int32).reshape(1)
    if hidden is None:
        h_prev = jnp.zeros((1, H), jnp.float32)
    else:
        h_prev = jnp.asarray(hidden, jnp.float32).reshape(1, H)

    h_new = gru_step_pallas(tok, params["embedding"], h_prev,
                            params["w_packed"], params["b_packed"])   # (1, 1, H)

    output = h_new   # (seq=1, batch=1, H)
    hidden = h_new   # (num_layers=1, batch=1, H)
    return output, hidden


# ----------------------------- Pure-JAX reference --------------------------

def encoder_forward_ref(params, token, hidden=None):
    H = params["w_hh"].shape[0]
    hp = jax.lax.Precision.HIGHEST
    x = params["embedding"][jnp.asarray(token).reshape(())].reshape(1, -1)
    h = jnp.zeros((1, H), jnp.float32) if hidden is None else jnp.asarray(hidden).reshape(1, H)
    gi = jnp.dot(x, params["w_ih"], precision=hp) + params["b_ih"]
    gh = jnp.dot(h, params["w_hh"], precision=hp) + params["b_hh"]
    r = jax.nn.sigmoid(gi[:, :H] + gh[:, :H])
    z = jax.nn.sigmoid(gi[:, H:2 * H] + gh[:, H:2 * H])
    n = jnp.tanh(gi[:, 2 * H:] + r * gh[:, 2 * H:])
    h_new = (1.0 - z) * n + z * h
    return h_new.reshape(1, 1, H), h_new.reshape(1, 1, H)


if __name__ == "__main__":
    INPUT_DIM, EMBED_DIM, HIDDEN_DIM = 16, 32, 32   # small, forward-consistent
    key = jax.random.PRNGKey(0)
    params = init_params(key, INPUT_DIM, EMBED_DIM, HIDDEN_DIM)

    token = jnp.array([3], dtype=jnp.int32)          # single token index

    output, hidden = encoder_forward(params, token)
    jax.block_until_ready((output, hidden))

    out_ref, hid_ref = encoder_forward_ref(params, token)
    assert output.shape == (1, 1, HIDDEN_DIM) and hidden.shape == (1, 1, HIDDEN_DIM)
    # bf16 weights / MXU inputs vs. f32 HIGHEST-precision reference -> ~1e-3 error.
    assert jnp.allclose(output, out_ref, atol=1e-2, rtol=1e-2), \
        float(jnp.max(jnp.abs(output - out_ref)))
    assert jnp.allclose(hidden, hid_ref, atol=1e-2, rtol=1e-2)

    print("KERNEL_OK")
</pallas_src>

<mosaic_0001>
module attributes {stable_mosaic.version = 11 : i64} {
  func.func @gru_encoder_kernel(%arg0: memref<1xi32, #tpu.memory_space<smem>>, %arg1: memref<16x32xf32, #tpu.memory_space<vmem>>, %arg2: memref<1x32xf32, #tpu.memory_space<vmem>>, %arg3: memref<64x128xbf16, #tpu.memory_space<vmem>>, %arg4: memref<1x128xf32, #tpu.memory_space<vmem>>, %arg5: memref<1x1x32xf32, #tpu.memory_space<vmem>>) attributes {dimension_semantics = [], scalar_prefetch = 0 : i64, scratch_operands = 0 : i64, tpu.core_type = #tpu.core_type<tc>} {
    %c0 = arith.constant 0 : index
    %0 = memref.load %arg0[%c0] : memref<1xi32, #tpu.memory_space<smem>>
    %1 = arith.index_cast %0 : i32 to index
    %c0_0 = arith.constant 0 : index
    %2 = vector.load %arg1[%1, %c0_0] : memref<16x32xf32, #tpu.memory_space<vmem>>, vector<1x32xf32>
    %3 = arith.truncf %2 : vector<1x32xf32> to vector<1x32xbf16>
    %c0_1 = arith.constant 0 : index
    %c0_2 = arith.constant 0 : index
    %4 = vector.load %arg2[%c0_1, %c0_2] : memref<1x32xf32, #tpu.memory_space<vmem>>, vector<1x32xf32>
    %c0_3 = arith.constant 0 : index
    %c0_4 = arith.constant 0 : index
    %5 = vector.load %arg3[%c0_3, %c0_4] : memref<64x128xbf16, #tpu.memory_space<vmem>>, vector<32x128xbf16>
    %cst = arith.constant dense<0.000000e+00> : vector<1x128xf32>
    %6 = tpu.matmul %3, %5, %cst {dimension_numbers = #tpu.dot_dimension_numbers<[1], [0], [0], [1], [0, 0, 1, 1], [], []>} : vector<1x32xbf16>, vector<32x128xbf16>, vector<1x128xf32> -> vector<1x128xf32>
    %7 = arith.truncf %4 : vector<1x32xf32> to vector<1x32xbf16>
    %c32 = arith.constant 32 : index
    %c0_5 = arith.constant 0 : index
    %8 = vector.load %arg3[%c32, %c0_5] : memref<64x128xbf16, #tpu.memory_space<vmem>>, vector<32x128xbf16>
    %cst_6 = arith.constant dense<0.000000e+00> : vector<1x128xf32>
    %9 = tpu.matmul %7, %8, %cst_6 {dimension_numbers = #tpu.dot_dimension_numbers<[1], [0], [0], [1], [0, 0, 1, 1], [], []>} : vector<1x32xbf16>, vector<32x128xbf16>, vector<1x128xf32> -> vector<1x128xf32>
    %10 = arith.addf %6, %9 : vector<1x128xf32>
    %c0_7 = arith.constant 0 : index
    %c0_8 = arith.constant 0 : index
    %11 = vector.load %arg4[%c0_7, %c0_8] : memref<1x128xf32, #tpu.memory_space<vmem>>, vector<1x128xf32>
    %12 = arith.addf %10, %11 : vector<1x128xf32>
    %13 = vector.extract_strided_slice %12 {offsets = [0, 0], sizes = [1, 32], strides = [1, 1]} : vector<1x128xf32> to vector<1x32xf32>
    %14 = arith.negf %13 : vector<1x32xf32>
    %15 = math.exp %14 : vector<1x32xf32>
    %cst_9 = arith.constant 1.000000e+00 : f32
    %16 = vector.broadcast %cst_9 : f32 to vector<1x32xf32>
    %17 = arith.addf %16, %15 : vector<1x32xf32>
    %18 = arith.divf %16, %17 : vector<1x32xf32>
    %19 = vector.extract_strided_slice %12 {offsets = [0, 32], sizes = [1, 32], strides = [1, 1]} : vector<1x128xf32> to vector<1x32xf32>
    %20 = arith.negf %19 : vector<1x32xf32>
    %21 = math.exp %20 : vector<1x32xf32>
    %cst_10 = arith.constant 1.000000e+00 : f32
    %22 = vector.broadcast %cst_10 : f32 to vector<1x32xf32>
    %23 = arith.addf %22, %21 : vector<1x32xf32>
    %24 = arith.divf %22, %23 : vector<1x32xf32>
    %25 = vector.extract_strided_slice %12 {offsets = [0, 64], sizes = [1, 32], strides = [1, 1]} : vector<1x128xf32> to vector<1x32xf32>
    %26 = vector.extract_strided_slice %12 {offsets = [0, 96], sizes = [1, 32], strides = [1, 1]} : vector<1x128xf32> to vector<1x32xf32>
    %27 = arith.mulf %18, %26 : vector<1x32xf32>
    %28 = arith.addf %25, %27 : vector<1x32xf32>
    %29 = math.tanh %28 : vector<1x32xf32>
    %cst_11 = arith.constant 1.000000e+00 : f32
    %30 = vector.broadcast %cst_11 : f32 to vector<1x32xf32>
    %31 = arith.subf %30, %24 : vector<1x32xf32>
    %32 = arith.mulf %31, %29 : vector<1x32xf32>
    %33 = arith.mulf %24, %4 : vector<1x32xf32>
    %34 = arith.addf %32, %33 : vector<1x32xf32>
    %35 = vector.shape_cast %34 : vector<1x32xf32> to vector<1x1x32xf32>
    %c0_12 = arith.constant 0 : index
    %c0_13 = arith.constant 0 : index
    %c0_14 = arith.constant 0 : index
    %36 = vector.load %arg5[%c0_12, %c0_13, %c0_14] : memref<1x1x32xf32, #tpu.memory_space<vmem>>, vector<1x1x32xf32>
    tpu.vector_store %arg5[%c0_12, %c0_13, %c0_14], %35 {strides = array<i32>} : memref<1x1x32xf32, #tpu.memory_space<vmem>>, vector<1x1x32xf32>,
    return
  }
}

</mosaic_0001>

<bundles_post_ra>
// kernel: encoder_forward.1
= control target key start
LH: loop header
LB: loop body
LE: loop exit
PB: predicated region body
PF: predicated region fallthrough
CT: control target
= control target key end

     0   :  { %11 = vsyncpa [#allocation4], 0  ;;  %s399_s0 = inlined_call_operand.<no memory space> [shape: s32[1], index: 0, kind: input, shape index: {}]   ;;  %s400_s1 = inlined_call_operand.hbm [shape: f32[16,32], index: 1, kind: input, shape index: {}]   ;;  %s401_s2 = inlined_call_operand.vmem [shape: f32[1,32], index: 2, kind: input, shape index: {}]   ;;  %s402_s3 = inlined_call_operand.hbm [shape: bf16[64,128], index: 3, kind: input, shape index: {}]   ;;  %s403_s4 = inlined_call_operand.vmem [shape: f32[1,128], index: 4, kind: input, shape index: {}]   ;;  %s404_s5 = inlined_call_operand.vmem [shape: f32[1,1,32], index: 5, kind: output, shape index: {}]  }
   0x1   :  { %12 = vsyncpa [#allocation6], 0  ;;  %s320_s18 = smov [#allocation3]   ;;  %s272_s22 = scalar_lea.hbm %s400_s1, 256 }
   0x2   :  { %s20_s19 = sshll.u32 %s320_s18, 4  ;;  %p273_p0 = scmp.ne.s32.totalorder %s400_s1, %s272_s22  ;;  %s21_s19 = int_to_ptr.vmem [resolvable:$true] %s20_s19 }
   0x3   :  { %p276_p1 = scmp.lt.u32.totalorder %s272_s22, %s400_s1 }
   0x5   :  { %p278_p2 = pnand %p276_p1, %p273_p0 }
   0x7   :  { %281 = shalt.err (!%p278_p2)
}
   0x8   :  { %s282_s27 = scalar_lea.vmem %s21_s19, 256  ;;  %p287_p4 = scmp.lt.s32.totalorder %s21_s19, %s21_s19 }
   0x9   :  { %p283_p3 = scmp.ne.s32.totalorder %s21_s19, %s282_s27  ;;  %p288_p5 = scmp.lt.s32.totalorder %s282_s27, %s282_s27 }
   0xb   :  { %p289_p6 = por %p288_p5, %p287_p4 }
   0xd   :  { %p290_p7 = pnand %p289_p6, %p283_p3 }
   0xf   :  { %293 = shalt.err (!%p290_p7)
}
  0x10   :  { %s321_s28 = smov 128   ;;  %s322_s29 = smov 8  }
  0x11   :  { %26 = dma.hbm_to_vmem [thread:$0]  %s400_s1, 256, %s21_s19, [#allocation4], %s321_s28, %s321_s28, %s322_s29  }
  0x12   :  { %s323_s7 = smov [#allocation5]   ;;  %s294_s11 = scalar_lea.hbm %s402_s3, 512 }
  0x13   :  { %s34_s8 = sshll.u32 %s323_s7, 4  ;;  %p295_p8 = scmp.ne.s32.totalorder %s402_s3, %s294_s11  ;;  %s35_s8 = int_to_ptr.vmem [resolvable:$true] %s34_s8 }
  0x14   :  { %p298_p9 = scmp.lt.u32.totalorder %s294_s11, %s402_s3 }
  0x16   :  { %p300_p10 = pnand %p298_p9, %p295_p8 }
  0x18   :  { %303 = shalt.err (!%p300_p10)
}
  0x19   :  { %s304_s16 = scalar_lea.vmem %s35_s8, 512  ;;  %p309_p12 = scmp.lt.s32.totalorder %s35_s8, %s35_s8 }
  0x1a   :  { %p305_p11 = scmp.ne.s32.totalorder %s35_s8, %s304_s16  ;;  %p310_p13 = scmp.lt.s32.totalorder %s304_s16, %s304_s16 }
  0x1c   :  { %p311_p0 = por %p310_p13, %p309_p12 }
  0x1e   :  { %p312_p1 = pnand %p311_p0, %p305_p11 }
  0x20   :  { %315 = shalt.err (!%p312_p1)
}
  0x21   :  { %s324_s1 = smov 64   ;;  %s325_s17 = smov 4  }
  0x22   :  { %40 = dma.hbm_to_vmem [thread:$0]  %s402_s3, 512, %s35_s8, [#allocation6], %s324_s1, %s324_s1, %s325_s17  }
  0x23   :  { %316 = dma.done.wait [#allocation4], 256  }
  0x24   :  { %317 = vsyncadd [#allocation4], 4294967040 }
  0x25   :  { %318 = dma.done.wait [#allocation6], 512  }
  0x26   :  { %319 = vsyncadd [#allocation6], 4294966784  ;;  %v326_v0 = vmov 0.0   ;;  %vm327_vm0 = vmmov 0   ;;  %v262_v1 = vld [vmem:[#allocation5 + $0x10] sm:$0xff]   ;;  %v263_v2 = vld [vmem:[#allocation5] sm:$0xff]   ;;  %v201_v28 = vlaneseq }
  0x27   :  { %236 = vmatprep.subr.bf16.mxu0 %v326_v0  ;;  %244 = vmatprep.subr.bf16.mxu1 %v326_v0  ;;  %v264_v3 = vld [vmem:[#allocation5 + $0x18] sm:$0xff]   ;;  %v265_v4 = vld [vmem:[#allocation5 + $0x8] sm:$0xff]   ;;  %v54_v5 = vld [vmem:[%s401_s2] sm:$0x1]  ;;  %s51_s23 = scalar_lea.vmem [#allocation3], %s399_s0  ;;  %vm76_vm1 = vcmask 261120  }
  0x28   :  { %240 = vmatprep.mubr.msk.bf16.mxu0 %vm327_vm0, %v326_v0  ;;  %248 = vmatprep.mubr.msk.bf16.mxu1 %vm327_vm0, %v326_v0  ;;  %v52_v6 = vld [vmem:[%s51_s23] sm:$0x1]  ;;  %v59_v7 = vpack.c.bf16 %v54_v5, %v54_v5  ;;  %s328_s0 = smov 32   ;;  %v202_v29 = vshrl.u32 %v201_v28, 7  ;;  %s329_s2 = smov 96   ;;  %vm214_vm2 = vcmask 253952  }
  0x29   :  { %237 = vmatpush3.bf16.msra.mxu0 %v262_v1  ;;  %245 = vmatpush3.bf16.msra.mxu1 %v263_v2  ;;  %v53_v8 = vpack.c.bf16 %v52_v6, %v52_v6  ;;  %v175_v11 = vld [vmem:[%s403_s4] sm:$0x1] }
  0x2a   :  { %238 = vmatprep.subr.bf16.mxu0 %v326_v0  ;;  %246 = vmatprep.subr.bf16.mxu1 %v326_v0  ;;  %v203_v30 = vsub.s32 0, %v202_v29 }
  0x2c   :  { %v204_v32 = vrot.slane %v54_v5, %v203_v30 }
  0x2d   :  { %239 = vmatpush3.bf16.msra.mxu0 %v264_v3  ;;  %247 = vmatpush3.bf16.msra.mxu1 %v265_v4 }
  0x30   :  { %241 = vmatmul.mubr.msk.bf16.vlgmr.msra.gmra.mrb[0].mxu0 %vm76_vm1, %v59_v7  ;;  %249 = vmatmul.mubr.msk.bf16.vlgmr.msra.gmra.mrb[0].mxu1 %vm76_vm1, %v53_v8 }
 0x103   :  { %v114_v9 = vpop.f32.mrb[0].mxu0  ;;  %v169_v10 = vpop.f32.mrb[0].mxu1 }
 0x104   :  { %v242_v12 = vpop.f32.mrb[1].mxu0  ;;  %v170_v13 = vadd.f32 %v169_v10, %v114_v9  ;;  %v250_v14 = vpop.f32.mrb[1].mxu1 }
 0x105   :  { %v117_v15 = vpop.f32.mrb[2].mxu0  ;;  %v172_v16 = vpop.f32.mrb[2].mxu1 }
 0x106   :  { %v243_v17 = vpop.f32.mrb[3].mxu0  ;;  %v176_v18 = vadd.f32 %v175_v11, %v170_v13  ;;  %v251_v19 = vpop.f32.mrb[3].mxu1 }
 0x108   :  { %184 = vrot.lane.b32.xlu0 %v176_v18, %s328_s0  ;;  %v229_v20 = vmul.f32 -1.442695, %v176_v18 }
 0x10a   :  { %266 = vpow2.f32 %v229_v20 }
 0x114   :  { %v267_v21 = vpop.eup %266 }
 0x115   :  { %v180_v22 = vadd.f32 1.0, %v267_v21 }
 0x117   :  { %268 = vrcp.f32 %v180_v22 }
 0x121   :  { %v269_v23 = vpop.eup %268 }
 0x122   :  { %v194_v34 = vsub.f32 1.0, %v269_v23 }
 0x17a   :  { %v185_v24 = vpop.permute.xlu0 %184 }
 0x17b   :  { %v187_v25 = vmul.f32 %v269_v23, %v185_v24 }
 0x17d   :  { %189 = vrot.lane.b32.xlu0 %v187_v25, %s324_s1 }
 0x1ef   :  { %v190_v26 = vpop.permute.xlu0 %189 }
 0x1f0   :  { %v192_v27 = vadd.f32 %v190_v26, %v176_v18 }
 0x1f2   :  { %270 = vtanh.f32 %v192_v27 }
 0x1fc   :  { %v271_v31 = vpop.eup %270 }
 0x1fd   :  { %196 = vrot.lane.b32.xlu1 %v271_v31, %s329_s2 }
 0x201   :  { %205 = vrot.lane.b32.xlu1 %v204_v32, %s328_s0 }
 0x26f   :  { %v197_v33 = vpop.permute.xlu1 %196 }
 0x270   :  { %v199_v36 = vmul.f32 %v197_v33, %v194_v34 }
 0x273   :  { %v206_v35 = vpop.permute.xlu1 %205 }
 0x274   :  { %v208_v37 = vmul.f32 %v269_v23, %v206_v35 }
 0x276   :  { %v209_v38 = vadd.f32 %v208_v37, %v199_v36 }
 0x278   :  { %211 = vrot.lane.b32.xlu0 %v209_v38, %s329_s2 }
 0x2ea   :  { %v212_v39 = vpop.permute.xlu0 %211 }
 0x2eb   :  { %215 = vst.msk [vmem:[%s404_s5] sm:$0x1] %vm214_vm2, %v212_v39 }
 0x2ec   :  { %220 = vsyncpa [#allocation4], 1 }
 0x2ed   :  { %221 = vsyncpa [#allocation6], 1 }

</bundles_post_ra>
